<compile_context>
chip_gen: v7x
topology: tpu7x:2x2x1
jax: 0.10.0
libtpu: 0.0.40
codegen_flags: <defaults>
</compile_context>

<pallas_src>
import functools

import numpy as np
import jax
import jax.numpy as jnp
from jax import lax
from jax.experimental import pallas as pl
from jax.experimental.pallas import tpu as pltpu


def _round_up(a, b):
    return (a + b - 1) // b * b


# ----------------------------------------------------------------------------
# Host-side (numpy) 1-D bilinear interpolation weights, matching
# F.interpolate(mode='bilinear', align_corners=False) along one axis.
# ----------------------------------------------------------------------------
def _linear_interp_weights(in_size, out_size):
    rows = np.arange(out_size, dtype=np.int64)
    src = (rows.astype(np.float64) + 0.5) * (in_size / out_size) - 0.5
    src = np.clip(src, 0.0, float(in_size - 1))
    i0 = np.minimum(np.floor(src).astype(np.int64), in_size - 1)
    i1 = np.minimum(i0 + 1, in_size - 1)
    w1 = src - i0.astype(np.float64)
    w0 = 1.0 - w1
    mat = np.zeros((out_size, in_size), np.float64)
    np.add.at(mat, (rows, i0), w0)
    np.add.at(mat, (rows, i1), w1)
    return mat.astype(np.float32)  # (out_size, in_size)


# ----------------------------------------------------------------------------
# VMEM accounting helpers (lane/sublane-padded footprints, per-gen budget).
# ----------------------------------------------------------------------------
def _padded_block_bytes(shape, dtype):
    itemsize = jnp.dtype(dtype).itemsize
    s = list(shape)
    if len(s) == 1:
        s = [1] + s
    packing = max(1, 4 // itemsize)          # sub-32-bit dtypes pack sublanes
    s[-1] = _round_up(s[-1], 128)
    s[-2] = _round_up(s[-2], 8 * packing)
    n = itemsize
    for d in s:
        n *= d
    return n


def _vmem_budget_bytes():
    phys = 64 << 20                          # conservative default (v7x/TC)
    try:
        cap = getattr(pltpu.get_tpu_info(), "vmem_capacity_bytes", None)
        if cap:
            phys = int(cap)
    except Exception:
        pass
    # Leave headroom for compiler-internal scratch: 3/4 of physical VMEM
    # (-> ~48 MiB on v7x, ~96 MiB on v5e/v6e), hard cap 100 MiB.
    return int(min((phys * 3) // 4, 100 << 20))


# ----------------------------------------------------------------------------
# Pallas kernel: per-tile masked-pooling partial sums.
#   x_ref / y_ref : (B, C, T) embedding tiles (native dtype, upcast here)
#   mx_ref/my_ref : (B, T)    interpolated masks (f32)
#   outputs       : (1,B,C) / (1,B,1) partial sums, one block per grid step.
# Grid: (n_tiles,) over the flattened spatial axis ("parallel" -> dual-TC v7x).
# ----------------------------------------------------------------------------
def _contra_pool_kernel(x_ref, y_ref, mx_ref, my_ref,
                        px_ref, py_ref, sx_ref, sy_ref,
                        *, t_lanes, n_x, n_y, mask_x_tail, mask_y_tail):
    k = pl.program_id(0)
    f32 = jnp.float32

    x = x_ref[...].astype(f32)               # (B, C, T)
    y = y_ref[...].astype(f32)
    mx = mx_ref[...].astype(f32)              # (B, T)
    my = my_ref[...].astype(f32)

    # Zero out lanes past the true spatial extent (ragged last tile, or grid
    # steps past this stream's tile count).  Static flags -> no cost when the
    # tiling divides evenly.
    if mask_x_tail:
        lane = lax.broadcasted_iota(jnp.int32, (1, t_lanes), 1)
        vx = (k * t_lanes + lane) < n_x       # (1, T)
        mx = jnp.where(vx, mx, 0.0)
        x = jnp.where(vx[:, None, :], x, 0.0)
    if mask_y_tail:
        lane = lax.broadcasted_iota(jnp.int32, (1, t_lanes), 1)
        vy = (k * t_lanes + lane) < n_y
        my = jnp.where(vy, my, 0.0)
        y = jnp.where(vy[:, None, :], y, 0.0)

    # F.normalize(e, dim=0, p=2): L2 over the BATCH dim per (c, hw) position.
    # max(sqrt(s), 1e-12) == sqrt(max(s, 1e-24)); rsqrt-multiply (EUP op).
    eps = jnp.float32(1e-24)
    xn = x * lax.rsqrt(jnp.maximum(jnp.sum(x * x, axis=0, keepdims=True), eps))
    yn = y * lax.rsqrt(jnp.maximum(jnp.sum(y * y, axis=0, keepdims=True), eps))

    # Masked pooling: one multiply + one lane reduction per stream.
    px_ref[...] = jnp.sum(xn * mx[:, None, :], axis=-1)[None]     # (1, B, C)
    py_ref[...] = jnp.sum(yn * my[:, None, :], axis=-1)[None]
    sx_ref[...] = jnp.sum(mx, axis=-1, keepdims=True)[None]       # (1, B, 1)
    sy_ref[...] = jnp.sum(my, axis=-1, keepdims=True)[None]


# ----------------------------------------------------------------------------
# Public wrapper (matches ContraLoss.forward).
# ----------------------------------------------------------------------------
def contra_loss(embedd_x, embedd_y, mask_x, mask_y, temperature=0.3,
                tile_lanes=None):
    B, C, Hx, Wx = embedd_x.shape
    By, Cy, Hy, Wy = embedd_y.shape
    Bmx, Cmx, Hmx, Wmx = mask_x.shape
    Bmy, Cmy, Hmy, Wmy = mask_y.shape
    assert B == By == Bmx == Bmy and C == Cy and Cmx == 1 and Cmy == 1

    f32 = jnp.float32
    Nx, Ny = Hx * Wx, Hy * Wy

    # Lane-dense flattening (free, contiguous).  Embeddings keep their native
    # dtype; upcast to f32 happens inside the kernel after the block DMA.
    x = embedd_x.reshape(B, C, Nx)
    y = embedd_y.reshape(B, C, Ny)

    # Separable bilinear mask interpolation, once, in plain XLA (tiny).
    whx = jnp.asarray(_linear_interp_weights(Hmx, Hx))   # (Hx, Hmx)
    wwx = jnp.asarray(_linear_interp_weights(Wmx, Wx))   # (Wx, Wmx)
    why = jnp.asarray(_linear_interp_weights(Hmy, Hy))
    wwy = jnp.asarray(_linear_interp_weights(Wmy, Wy))
    mxi = jnp.einsum('hp,bpq,wq->bhw', whx, mask_x[:, 0].astype(f32), wwx)
    myi = jnp.einsum('hp,bpq,wq->bhw', why, mask_y[:, 0].astype(f32), wwy)
    mxi = mxi.reshape(B, Nx)
    myi = myi.reshape(B, Ny)

    # ---- tile size from PADDED footprints vs. per-generation VMEM budget ----
    budget = _vmem_budget_bytes()
    if tile_lanes is None:
        per_col = (_padded_block_bytes((B, C, 128), x.dtype)
                   + _padded_block_bytes((B, C, 128), y.dtype)
                   + 2 * _padded_block_bytes((B, 128), f32))
        t = max(1, budget // (2 * per_col)) * 128         # 2x: double buffering
    else:
        t = _round_up(int(tile_lanes), 128)
    t = int(max(128, min(t, _round_up(max(Nx, Ny), 128))))

    kx = -(-Nx // t)
    ky = -(-Ny // t)
    n_tiles = max(kx, ky)
    mask_x_tail = (Nx % t != 0) or (kx < n_tiles)
    mask_y_tail = (Ny % t != 0) or (ky < n_tiles)

    def _map3(last_blk):
        if last_blk >= n_tiles - 1:
            return lambda k: (0, 0, k)
        return lambda k, _l=last_blk: (0, 0, jnp.minimum(k, _l))

    def _map2(last_blk):
        if last_blk >= n_tiles - 1:
            return lambda k: (0, k)
        return lambda k, _l=last_blk: (0, jnp.minimum(k, _l))

    in_specs = [
        pl.BlockSpec((B, C, t), _map3(kx - 1)),
        pl.BlockSpec((B, C, t), _map3(ky - 1)),
        pl.BlockSpec((B, t), _map2(kx - 1)),
        pl.BlockSpec((B, t), _map2(ky - 1)),
    ]
    out_specs = (
        pl.BlockSpec((1, B, C), lambda k: (k, 0, 0)),
        pl.BlockSpec((1, B, C), lambda k: (k, 0, 0)),
        pl.BlockSpec((1, B, 1), lambda k: (k, 0, 0)),
        pl.BlockSpec((1, B, 1), lambda k: (k, 0, 0)),
    )
    out_shape = (
        jax.ShapeDtypeStruct((n_tiles, B, C), f32),
        jax.ShapeDtypeStruct((n_tiles, B, C), f32),
        jax.ShapeDtypeStruct((n_tiles, B, 1), f32),
        jax.ShapeDtypeStruct((n_tiles, B, 1), f32),
    )

    # Honest VMEM request: double-buffered streamed blocks + outputs + margin,
    # capped by the same per-generation budget the tile was sized from.
    est = (2 * (_padded_block_bytes((B, C, t), x.dtype)
                + _padded_block_bytes((B, C, t), y.dtype)
                + 2 * _padded_block_bytes((B, t), f32))
           + 2 * (2 * _padded_block_bytes((1, B, C), f32)
                  + 2 * _padded_block_bytes((1, B, 1), f32))
           + (4 << 20))
    vmem_limit = int(min(max(est, 16 << 20), budget))

    isz_x = jnp.dtype(x.dtype).itemsize
    isz_y = jnp.dtype(y.dtype).itemsize
    cost = pl.CostEstimate(
        flops=int(6 * B * C * (Nx + Ny)),
        transcendentals=int(Nx + Ny),
        bytes_accessed=int(B * C * (Nx * isz_x + Ny * isz_y)
                           + 4 * B * (Nx + Ny)
                           + 4 * n_tiles * B * (2 * C + 2)),
    )

    kernel = functools.partial(
        _contra_pool_kernel, t_lanes=t, n_x=Nx, n_y=Ny,
        mask_x_tail=mask_x_tail, mask_y_tail=mask_y_tail)

    px_p, py_p, sx_p, sy_p = pl.pallas_call(
        kernel,
        out_shape=out_shape,
        grid=(n_tiles,),
        in_specs=in_specs,
        out_specs=out_specs,
        compiler_params=pltpu.CompilerParams(
            dimension_semantics=("parallel",),   # partial sums -> dual-TC on v7x
            vmem_limit_bytes=vmem_limit,
        ),
        cost_estimate=cost,
    )(x, y, mxi, myi)

    # ---- tiny (B,B) epilogue in XLA (O(B^2 C) work) --------------------------
    px = jnp.sum(px_p, axis=0) / jnp.sum(sx_p, axis=0)    # (B,C) / (B,1)
    py = jnp.sum(py_p, axis=0) / jnp.sum(sy_p, axis=0)
    nxv = jnp.maximum(jnp.linalg.norm(px, axis=-1, keepdims=True), 1e-8)
    nyv = jnp.maximum(jnp.linalg.norm(py, axis=-1, keepdims=True), 1e-8)
    sim = ((px / nxv) @ (py / nyv).T) / jnp.float32(temperature)
    m = jnp.max(sim)                                       # max-subtracted LSE
    e = jnp.exp(sim - m)
    # loss = -log(sum(exp(diag)) / sum(exp(all)))
    return jnp.log(jnp.sum(e)) - jnp.log(jnp.trace(e))


# ----------------------------------------------------------------------------
# Pure-JAX reference (same math as the PyTorch module) for a sanity check.
# ----------------------------------------------------------------------------
def _reference(embedd_x, embedd_y, mask_x, mask_y, temperature=0.3):
    B, C, Hx, Wx = embedd_x.shape
    _, _, Hy, Wy = embedd_y.shape
    _, _, Hmx, Wmx = mask_x.shape
    _, _, Hmy, Wmy = mask_y.shape

    def norm0(e):
        return e / jnp.maximum(jnp.sqrt(jnp.sum(e * e, axis=0, keepdims=True)), 1e-12)

    x = norm0(embedd_x.astype(jnp.float32))
    y = norm0(embedd_y.astype(jnp.float32))
    whx = jnp.asarray(_linear_interp_weights(Hmx, Hx))
    wwx = jnp.asarray(_linear_interp_weights(Wmx, Wx))
    why = jnp.asarray(_linear_interp_weights(Hmy, Hy))
    wwy = jnp.asarray(_linear_interp_weights(Wmy, Wy))
    mxi = jnp.einsum('hp,bpq,wq->bhw', whx, mask_x[:, 0].astype(jnp.float32), wwx)
    myi = jnp.einsum('hp,bpq,wq->bhw', why, mask_y[:, 0].astype(jnp.float32), wwy)
    px = jnp.sum(x * mxi[:, None], axis=(-1, -2)) / jnp.sum(mxi, axis=(-1, -2))[:, None]
    py = jnp.sum(y * myi[:, None], axis=(-1, -2)) / jnp.sum(myi, axis=(-1, -2))[:, None]
    pxn = px / jnp.maximum(jnp.linalg.norm(px, axis=-1, keepdims=True), 1e-8)
    pyn = py / jnp.maximum(jnp.linalg.norm(py, axis=-1, keepdims=True), 1e-8)
    sim = (pxn @ pyn.T) / temperature
    e = jnp.exp(sim)
    return -jnp.log(jnp.trace(e) / jnp.sum(e))


if __name__ == "__main__":
    keys = jax.random.split(jax.random.PRNGKey(0), 8)

    # --- case 1: evenly-dividing tiles (tile_lanes=128 -> 2 grid steps) ------
    B, C, H, W = 2, 4, 16, 16       # embedding feature maps (NCHW)
    Hm, Wm = 32, 32                 # raw single-channel mask resolution
    embedd_x = jax.random.normal(keys[0], (B, C, H, W), jnp.float32)
    embedd_y = jax.random.normal(keys[1], (B, C, H, W), jnp.float32)
    mask_x = jax.random.uniform(keys[2], (B, 1, Hm, Wm), jnp.float32)
    mask_y = jax.random.uniform(keys[3], (B, 1, Hm, Wm), jnp.float32)

    loss = contra_loss(embedd_x, embedd_y, mask_x, mask_y,
                       temperature=0.3, tile_lanes=128)
    loss = jax.block_until_ready(loss)
    ref = _reference(embedd_x, embedd_y, mask_x, mask_y, temperature=0.3)
    assert jnp.isfinite(loss), "loss is not finite"
    assert jnp.allclose(loss, ref, rtol=2e-4, atol=1e-5), (loss, ref)

    # --- case 2: ragged last tiles + unequal x/y spatial / mask sizes --------
    ex2 = jax.random.normal(keys[4], (2, 6, 12, 20), jnp.float32)   # Nx = 240
    ey2 = jax.random.normal(keys[5], (2, 6, 8, 20), jnp.float32)    # Ny = 160
    mx2 = jax.random.uniform(keys[6], (2, 1, 27, 31), jnp.float32)
    my2 = jax.random.uniform(keys[7], (2, 1, 23, 29), jnp.float32)

    loss2 = contra_loss(ex2, ey2, mx2, my2, temperature=0.3, tile_lanes=128)
    loss2 = jax.block_until_ready(loss2)
    ref2 = _reference(ex2, ey2, mx2, my2, temperature=0.3)
    assert jnp.isfinite(loss2), "loss2 is not finite"
    assert jnp.allclose(loss2, ref2, rtol=2e-4, atol=1e-5), (loss2, ref2)

    print("KERNEL_OK")
</pallas_src>

<mosaic_0001>
module attributes {stable_mosaic.version = 11 : i64} {
  func.func @_contra_pool_kernel(%arg0: i32, %arg1: memref<2x4x128xf32, #tpu.memory_space<vmem>>, %arg2: memref<2x4x128xf32, #tpu.memory_space<vmem>>, %arg3: memref<2x128xf32, #tpu.memory_space<vmem>>, %arg4: memref<2x128xf32, #tpu.memory_space<vmem>>, %arg5: memref<1x2x4xf32, #tpu.memory_space<vmem>>, %arg6: memref<1x2x4xf32, #tpu.memory_space<vmem>>, %arg7: memref<1x2x1xf32, #tpu.memory_space<vmem>>, %arg8: memref<1x2x1xf32, #tpu.memory_space<vmem>>) attributes {dimension_semantics = [#tpu.dimension_semantics<parallel>], iteration_bounds = array<i64: 2>, scalar_prefetch = 0 : i64, scratch_operands = 0 : i64, tpu.core_type = #tpu.core_type<tc>, window_params = [{transform_indices = @transform_0, window_bounds = array<i64: 2, 4, 128>}, {transform_indices = @transform_1, window_bounds = array<i64: 2, 4, 128>}, {transform_indices = @transform_2, window_bounds = array<i64: 2, 128>}, {transform_indices = @transform_3, window_bounds = array<i64: 2, 128>}, {transform_indices = @transform_4, window_bounds = array<i64: 1, 2, 4>}, {transform_indices = @transform_5, window_bounds = array<i64: 1, 2, 4>}, {transform_indices = @transform_6, window_bounds = array<i64: 1, 2, 1>}, {transform_indices = @transform_7, window_bounds = array<i64: 1, 2, 1>}]} {
    %c0 = arith.constant 0 : index
    %c0_0 = arith.constant 0 : index
    %c0_1 = arith.constant 0 : index
    %0 = vector.load %arg1[%c0, %c0_0, %c0_1] : memref<2x4x128xf32, #tpu.memory_space<vmem>>, vector<2x4x128xf32>
    %c0_2 = arith.constant 0 : index
    %c0_3 = arith.constant 0 : index
    %c0_4 = arith.constant 0 : index
    %1 = vector.load %arg2[%c0_2, %c0_3, %c0_4] : memref<2x4x128xf32, #tpu.memory_space<vmem>>, vector<2x4x128xf32>
    %c0_5 = arith.constant 0 : index
    %c0_6 = arith.constant 0 : index
    %2 = vector.load %arg3[%c0_5, %c0_6] : memref<2x128xf32, #tpu.memory_space<vmem>>, vector<2x128xf32>
    %c0_7 = arith.constant 0 : index
    %c0_8 = arith.constant 0 : index
    %3 = vector.load %arg4[%c0_7, %c0_8] : memref<2x128xf32, #tpu.memory_space<vmem>>, vector<2x128xf32>
    %4 = arith.mulf %0, %0 : vector<2x4x128xf32>
    %cst = arith.constant dense<0.000000e+00> : vector<4x128xf32>
    %5 = vector.multi_reduction <add>, %4, %cst [0] : vector<2x4x128xf32> to vector<4x128xf32>
    %6 = vector.shape_cast %5 : vector<4x128xf32> to vector<1x4x128xf32>
    %cst_9 = arith.constant 1.000000e-24 : f32
    %7 = vector.broadcast %cst_9 : f32 to vector<1x4x128xf32>
    %8 = arith.maximumf %6, %7 : vector<1x4x128xf32>
    %9 = math.rsqrt %8 : vector<1x4x128xf32>
    %10 = vector.broadcast %9 : vector<1x4x128xf32> to vector<2x4x128xf32>
    %11 = arith.mulf %0, %10 : vector<2x4x128xf32>
    %12 = arith.mulf %1, %1 : vector<2x4x128xf32>
    %cst_10 = arith.constant dense<0.000000e+00> : vector<4x128xf32>
    %13 = vector.multi_reduction <add>, %12, %cst_10 [0] : vector<2x4x128xf32> to vector<4x128xf32>
    %14 = vector.shape_cast %13 : vector<4x128xf32> to vector<1x4x128xf32>
    %cst_11 = arith.constant 1.000000e-24 : f32
    %15 = vector.broadcast %cst_11 : f32 to vector<1x4x128xf32>
    %16 = arith.maximumf %14, %15 : vector<1x4x128xf32>
    %17 = math.rsqrt %16 : vector<1x4x128xf32>
    %18 = vector.broadcast %17 : vector<1x4x128xf32> to vector<2x4x128xf32>
    %19 = arith.mulf %1, %18 : vector<2x4x128xf32>
    %20 = vector.shape_cast %2 : vector<2x128xf32> to vector<2x1x128xf32>
    %21 = vector.broadcast %20 : vector<2x1x128xf32> to vector<2x4x128xf32>
    %22 = arith.mulf %11, %21 : vector<2x4x128xf32>
    %cst_12 = arith.constant dense<0.000000e+00> : vector<2x4xf32>
    %23 = vector.multi_reduction <add>, %22, %cst_12 [2] : vector<2x4x128xf32> to vector<2x4xf32>
    %24 = vector.shape_cast %23 : vector<2x4xf32> to vector<1x2x4xf32>
    %c0_13 = arith.constant 0 : index
    %c0_14 = arith.constant 0 : index
    %c0_15 = arith.constant 0 : index
    %25 = vector.load %arg5[%c0_13, %c0_14, %c0_15] : memref<1x2x4xf32, #tpu.memory_space<vmem>>, vector<1x2x4xf32>
    tpu.vector_store %arg5[%c0_13, %c0_14, %c0_15], %24 {strides = array<i32>} : memref<1x2x4xf32, #tpu.memory_space<vmem>>, vector<1x2x4xf32>,
    %26 = vector.shape_cast %3 : vector<2x128xf32> to vector<2x1x128xf32>
    %27 = vector.broadcast %26 : vector<2x1x128xf32> to vector<2x4x128xf32>
    %28 = arith.mulf %19, %27 : vector<2x4x128xf32>
    %cst_16 = arith.constant dense<0.000000e+00> : vector<2x4xf32>
    %29 = vector.multi_reduction <add>, %28, %cst_16 [2] : vector<2x4x128xf32> to vector<2x4xf32>
    %30 = vector.shape_cast %29 : vector<2x4xf32> to vector<1x2x4xf32>
    %c0_17 = arith.constant 0 : index
    %c0_18 = arith.constant 0 : index
    %c0_19 = arith.constant 0 : index
    %31 = vector.load %arg6[%c0_17, %c0_18, %c0_19] : memref<1x2x4xf32, #tpu.memory_space<vmem>>, vector<1x2x4xf32>
    tpu.vector_store %arg6[%c0_17, %c0_18, %c0_19], %30 {strides = array<i32>} : memref<1x2x4xf32, #tpu.memory_space<vmem>>, vector<1x2x4xf32>,
    %cst_20 = arith.constant dense<0.000000e+00> : vector<2xf32>
    %32 = vector.multi_reduction <add>, %2, %cst_20 [1] : vector<2x128xf32> to vector<2xf32>
    %33 = vector.shape_cast %32 : vector<2xf32> to vector<2x1xf32>
    %34 = vector.shape_cast %33 : vector<2x1xf32> to vector<1x2x1xf32>
    %c0_21 = arith.constant 0 : index
    %c0_22 = arith.constant 0 : index
    %c0_23 = arith.constant 0 : index
    %35 = vector.load %arg7[%c0_21, %c0_22, %c0_23] : memref<1x2x1xf32, #tpu.memory_space<vmem>>, vector<1x2x1xf32>
    tpu.vector_store %arg7[%c0_21, %c0_22, %c0_23], %34 {strides = array<i32>} : memref<1x2x1xf32, #tpu.memory_space<vmem>>, vector<1x2x1xf32>,
    %cst_24 = arith.constant dense<0.000000e+00> : vector<2xf32>
    %36 = vector.multi_reduction <add>, %3, %cst_24 [1] : vector<2x128xf32> to vector<2xf32>
    %37 = vector.shape_cast %36 : vector<2xf32> to vector<2x1xf32>
    %38 = vector.shape_cast %37 : vector<2x1xf32> to vector<1x2x1xf32>
    %c0_25 = arith.constant 0 : index
    %c0_26 = arith.constant 0 : index
    %c0_27 = arith.constant 0 : index
    %39 = vector.load %arg8[%c0_25, %c0_26, %c0_27] : memref<1x2x1xf32, #tpu.memory_space<vmem>>, vector<1x2x1xf32>
    tpu.vector_store %arg8[%c0_25, %c0_26, %c0_27], %38 {strides = array<i32>} : memref<1x2x1xf32, #tpu.memory_space<vmem>>, vector<1x2x1xf32>,
    return
  }
  func.func @transform_0(%arg0: i32) -> (i32, i32, i32) {
    %c0_i32 = arith.constant 0 : i32
    %c0_i32_0 = arith.constant 0 : i32
    %c0_i32_1 = arith.constant 0 : i32
    return %c0_i32, %c0_i32_0, %arg0 : i32, i32, i32
  }
  func.func @transform_1(%arg0: i32) -> (i32, i32, i32) {
    %c0_i32 = arith.constant 0 : i32
    %c0_i32_0 = arith.constant 0 : i32
    %c0_i32_1 = arith.constant 0 : i32
    return %c0_i32, %c0_i32_0, %arg0 : i32, i32, i32
  }
  func.func @transform_2(%arg0: i32) -> (i32, i32) {
    %c0_i32 = arith.constant 0 : i32
    %c0_i32_0 = arith.constant 0 : i32
    return %c0_i32, %arg0 : i32, i32
  }
  func.func @transform_3(%arg0: i32) -> (i32, i32) {
    %c0_i32 = arith.constant 0 : i32
    %c0_i32_0 = arith.constant 0 : i32
    return %c0_i32, %arg0 : i32, i32
  }
  func.func @transform_4(%arg0: i32) -> (i32, i32, i32) {
    %c0_i32 = arith.constant 0 : i32
    %c0_i32_0 = arith.constant 0 : i32
    %c0_i32_1 = arith.constant 0 : i32
    return %arg0, %c0_i32, %c0_i32_0 : i32, i32, i32
  }
  func.func @transform_5(%arg0: i32) -> (i32, i32, i32) {
    %c0_i32 = arith.constant 0 : i32
    %c0_i32_0 = arith.constant 0 : i32
    %c0_i32_1 = arith.constant 0 : i32
    return %arg0, %c0_i32, %c0_i32_0 : i32, i32, i32
  }
  func.func @transform_6(%arg0: i32) -> (i32, i32, i32) {
    %c0_i32 = arith.constant 0 : i32
    %c0_i32_0 = arith.constant 0 : i32
    %c0_i32_1 = arith.constant 0 : i32
    return %arg0, %c0_i32, %c0_i32_0 : i32, i32, i32
  }
  func.func @transform_7(%arg0: i32) -> (i32, i32, i32) {
    %c0_i32 = arith.constant 0 : i32
    %c0_i32_0 = arith.constant 0 : i32
    %c0_i32_1 = arith.constant 0 : i32
    return %arg0, %c0_i32, %c0_i32_0 : i32, i32, i32
  }
}

</mosaic_0001>

<bundles_post_ra>
// kernel: tpu_custom_call.1
= control target key start
LH: loop header
LB: loop body
LE: loop exit
PB: predicated region body
PF: predicated region fallthrough
CT: control target
= control target key end

     0   :  { %s1384_s0 = inlined_call_operand.hbm [shape: f32[2,4,256], index: 0, kind: input, shape index: {}]   ;;  %s1385_s1 = inlined_call_operand.hbm [shape: f32[2,4,256], index: 1, kind: input, shape index: {}]   ;;  %s1386_s2 = inlined_call_operand.vmem [shape: f32[2,256], index: 2, kind: input, shape index: {}]   ;;  %s1387_s3 = inlined_call_operand.vmem [shape: f32[2,256], index: 3, kind: input, shape index: {}]   ;;  %s1388_s4 = inlined_call_operand.hbm [shape: f32[2,2,4], index: 4, kind: output, shape index: {0}]   ;;  %s1389_s5 = inlined_call_operand.hbm [shape: f32[2,2,4], index: 5, kind: output, shape index: {1}]   ;;  %s1390_s6 = inlined_call_operand.vmem [shape: f32[2,2,1], index: 6, kind: output, shape index: {2}]   ;;  %s1391_s7 = inlined_call_operand.vmem [shape: f32[2,2,1], index: 7, kind: output, shape index: {3}]  }
   0x1   :  { %1397 = sst [smem:[#allocation16_spill]] %s1384_s0 }
   0x2   :  { %13 = vsyncpa [#allocation3], 0 }
   0x3   :  { %15 = vsyncpa [#allocation3 + $0x1], 0 }
   0x4   :  { %16 = vsyncpa [#allocation6], 0 }
   0x5   :  { %18 = vsyncpa [#allocation6 + $0x1], 0 }
   0x6   :  { %19 = vsyncpa [#allocation4], 0 }
   0x7   :  { %21 = vsyncpa [#allocation4 + $0x1], 0 }
   0x8   :  { %22 = vsyncpa [#allocation9], 0 }
   0x9   :  { %24 = vsyncpa [#allocation9 + $0x1], 0  ;;  %s1088_s24 = smov 0   ;;  %s1090_s25 = smov 0  }
   0xa   :  { %s1092_s26 = smov 0   ;;  %s1094_s27 = smov 0  }
   0xb LB: > { %1398 = sst [smem:[#allocation14_spill]] %s1034_s26  ;;  %s1109_s28 = sadd.s32 4294967295, %s1038_s27   ;;  %s1038_s27 = sphi %s1094_s27, %s1418_s27   ;;  %s1034_s26 = sphi %s1092_s26, %s1415_s26   ;;  %s1030_s25 = sphi %s1090_s25, %s1417_s25   ;;  %s1026_s24 = sphi %s1088_s24, %s1416_s24  }
   0xc   : > { %s790_s29 = sadd.s32 4294967294, %s1038_s27   ;;  %s1113_s30 = sadd.s32 1, %s1038_s27  }
   0xd   : > { %s37_s8 = sadd.s32 1, %s1034_s26  ;;  %s34_s9 = ssub.s32 %s1038_s27, %s1113_s30 }
   0xe   : > { %p44_p0 = scmp.ne.s32.totalorder %s1034_s26, %s1030_s25  ;;  %p35_p1 = scmp.eq.s32.totalorder %s34_s9, 0 }
   0xf   : > { %p45_p2 = scmp.eq.s32.totalorder %s1038_s27, 0  ;;  %p50_p3 = scmp.ne.s32.totalorder %s1030_s25, %s1026_s24 }
  0x10   : > { %p51_p4 = scmp.eq.s32.totalorder %s1109_s28, 0  ;;  %p152_p7 = scmp.eq.s32.totalorder %s1109_s28, 1 }
  0x11   : > { %s1125_s10 = scalar_select %p35_p1, %s1034_s26, %s37_s8  }
  0x12   : > { %p1127_p5 = por %p45_p2, %p44_p0  ;;  %p1131_p6 = por %p51_p4, %p50_p3 }
  0x13   : > { %1399 = sst [smem:[#allocation15_spill]] %s1125_s10  ;;  %p158_p8 = scmp.eq.s32.totalorder %s790_s29, 1 }
  0x14   : > { %s1401_s12 = scalar_select %p1131_p6, 1, 0 }
  0x15   : > { %p834_p10 = scmp.lt.s32.totalorder %s1038_s27, 2  ;;  %p1138_p11 = por %p152_p7, %p44_p0 }
  0x16   : > { %p1142_p12 = por %p158_p8, %p50_p3  ;;  %s1147_s15 = sand.u32 1, %s1034_s26  }
  0x17   : > { %s1402_s13 = scalar_select %p1138_p11, 1, 0 }
  0x18   : > { %s1403_s14 = scalar_select %p1142_p12, 1, 0 }
  0x19   : > { %s794_s16 = sshll.u32 %s1038_s27, 6  ;;  %s1392_s17 = sshll.u32 %s1147_s15, 3 }
  0x1a   : > { %s1404_s0 = sld [smem:[#allocation16_spill]]  ;;  %s260_s21 = scalar_lea.vmem [#allocation2], %s1392_s17 }
  0x1b   : > { %s266_s22 = sshll.u32 %s260_s21, 4  ;;  %p1162_p13 = pnand %p834_p10, %p1127_p5  ;;  %s1166_s22 = int_to_ptr.vmem [resolvable:$true] %s266_s22 }
  0x1c   : > { %s257_s29 = scalar_lea.sflag [#allocation3], %s1147_s15 }
  0x1d   : > { %p878_p2 = pneg %p1162_p13 }
  0x20   : > { %s1156_s20 = scalar_lea.hbm %s1404_s0, %s794_s16  ;;  %s881_s18 = scalar_lea.hbm %s1404_s0, 256 }
  0x21   : > { %s876_s8 = scalar_lea.hbm %s1156_s20, 128  ;;  %p882_p5 = scmp.lt.u32.totalorder %s1156_s20, %s1404_s0 }
  0x22   : > { %p877_p1 = scmp.ne.s32.totalorder %s1156_s20, %s876_s8  ;;  %p883_p7 = scmp.lt.u32.totalorder %s881_s18, %s876_s8 }
  0x23   : > { %p885_p10 = scmp.lt.u32.totalorder %s876_s8, %s1156_s20 }
  0x24   : > { %p879_p3 = pnand %p878_p2, %p877_p1  ;;  %p884_p8 = por %p883_p7, %p882_p5 }
  0x26   : > { %p880_p4 = pneg %p879_p3  ;;  %p886_p9 = por %p885_p10, %p884_p8 }
  0x28   : > { %p887_p0 = pnand %p886_p9, %p880_p4 }
  0x2a   : > { %890 = shalt.err (!%p887_p0)
}
  0x2b   : > { %s891_s17 = scalar_lea.vmem %s1166_s22, 128  ;;  %s1040_s9 = smov [#allocation2]  }
  0x2c   : > { %p892_p1 = scmp.ne.s32.totalorder %s1166_s22, %s891_s17  ;;  %s896_s11 = sshll.u32 %s1040_s9, 4  ;;  %s897_s11 = int_to_ptr.vmem [resolvable:$false] %s896_s11 }
  0x2d   : > { %s898_s19 = scalar_lea.vmem %s897_s11, 256  ;;  %p899_p11 = scmp.lt.s32.totalorder %s1166_s22, %s897_s11 }
  0x2e   : > { %p894_p3 = pnand %p892_p1, %p878_p2  ;;  %p900_p5 = scmp.lt.s32.totalorder %s898_s19, %s891_s17 }
  0x30   : > { %p895_p12 = pneg %p894_p3  ;;  %p901_p7 = por %p900_p5, %p899_p11 }
  0x32   : > { %p902_p8 = pnand %p901_p7, %p895_p12 }
  0x34   : > { %905 = shalt.err (!%p902_p8)
}
  0x35   : > { %s1395_s8 = smov 128   ;;  %s1042_s18 = smov 64  }
  0x36   : > { %s1043_s21 = smov 4   ;;  %p308_p9 = scmp.lt.s32.totalorder %s1038_s27, 3 }
  0x37   : > { %823 = dma.hbm_to_vmem [thread:$0]  (!%p1162_p13), %s1156_s20, 128, %s1166_s22, %s257_s29, %s1395_s8, %s1042_s18, %s1043_s21  }
  0x38   : > { %s1206_s11 = scalar_lea.hbm %s1385_s1, %s794_s16  ;;  %p1406_p11 = scmp.ge.s32.totalorder %s1038_s27, 1 }
  0x39   : > { %s1408_s0 = sshll.u32 %s1147_s15, 3  ;;  %s277_s20 = scalar_lea.sflag [#allocation6], %s1147_s15 }
  0x3a   : > { %p1210_p12 = pnand %p1406_p11, %p308_p9  ;;  %s280_s10 = scalar_lea.vmem [#allocation5], %s1408_s0 }
  0x3b   : > { %s286_s26 = sshll.u32 %s280_s10, 4  ;;  %s906_s22 = scalar_lea.hbm %s1206_s11, 128  ;;  %s1216_s26 = int_to_ptr.vmem [resolvable:$true] %s286_s26 }
  0x3c   : > { %p907_p0 = scmp.ne.s32.totalorder %s1206_s11, %s906_s22  ;;  %s911_s17 = scalar_lea.hbm %s1385_s1, 256 }
  0x3d   : > { %p912_p1 = scmp.lt.u32.totalorder %s1206_s11, %s1385_s1  ;;  %p913_p3 = scmp.lt.u32.totalorder %s911_s17, %s906_s22 }
  0x3e   : > { %p909_p4 = pnand %p907_p0, %p878_p2  ;;  %p915_p7 = scmp.lt.u32.totalorder %s906_s22, %s1206_s11 }
  0x3f   : > { %p914_p5 = por %p913_p3, %p912_p1 }
  0x40   : > { %p910_p10 = pneg %p909_p4 }
  0x41   : > { %p916_p8 = por %p915_p7, %p914_p5 }
  0x43   : > { %p917_p9 = pnand %p916_p8, %p910_p10 }
  0x45   : > { %920 = shalt.err (!%p917_p9)
}
  0x46   : > { %s921_s0 = scalar_lea.vmem %s1216_s26, 128  ;;  %s1044_s10 = smov [#allocation5]  }
  0x47   : > { %p922_p11 = scmp.ne.s32.totalorder %s1216_s26, %s921_s0  ;;  %s926_s16 = sshll.u32 %s1044_s10, 4  ;;  %s927_s16 = int_to_ptr.vmem [resolvable:$false] %s926_s16 }
  0x48   : > { %s928_s8 = scalar_lea.vmem %s927_s16, 256  ;;  %p929_p6 = scmp.lt.s32.totalorder %s1216_s26, %s927_s16 }
  0x49   : > { %p924_p0 = pnand %p922_p11, %p878_p2  ;;  %p930_p1 = scmp.lt.s32.totalorder %s928_s8, %s921_s0 }
  0x4b   : > { %p925_p4 = pneg %p924_p0  ;;  %p931_p3 = por %p930_p1, %p929_p6 }
  0x4d   : > { %p932_p5 = pnand %p931_p3, %p925_p4 }
  0x4f   : > { %935 = shalt.err (!%p932_p5)
}
  0x50   : > { %s1409_s22 = smov 128   ;;  %312 = sbr.rel (%p1210_p12) target bundleno = 303 (0x12f), region = 36 }
  0x51   : > { %826 = dma.hbm_to_vmem [thread:$0]  (!%p1162_p13), %s1206_s11, 128, %s1216_s26, %s277_s20, %s1409_s22, %s1042_s18, %s1043_s21  }
  0x52   : > { %s1250_s29 = sand.u32 (!%p1210_p12), 1, %s1030_s25   ;;  %p1410_p6 = scmp.ne.s32.totalorder (!%p1210_p12), %s1401_s12, 0 }
  0x53   : > { %s798_s17 = sshll.u32 (!%p1210_p12), %s1250_s29, 3  ;;  %s315_s9 = scalar_lea.sflag (!%p1210_p12), [#allocation3], %s1250_s29 }
  0x54   : > { %s318_s23 = scalar_lea.vmem (!%p1210_p12), [#allocation2], %s798_s17 }
  0x57   : > { %1009 = dma.done.wait (%p1410_p6), %s315_s9, 128  }
  0x58   : > { %1011 = vsyncadd (%p1410_p6), %s315_s9, 4294967168  ;;  %s324_s26 = scalar_lea.sflag [#allocation6], %s1250_s29  ;;  %s327_s15 = scalar_lea.vmem [#allocation5], %s798_s17 }
  0x59   : > { %1013 = dma.done.wait (%p1410_p6), %s324_s26, 128  }
  0x5a   : > { %1015 = vsyncadd (%p1410_p6), %s324_s26, 4294967168  ;;  %p384_p13 = scmp.lt.s32.totalorder %s1109_s28, 1  ;;  %v429_v0 = vlaneseq  ;;  %v1045_v1 = vmov 1966171168   ;;  %v402_v7 = vld [vmem:[%s327_s15] sm:$0xf] }
  0x5b   : > { %v427_v2 = vunpack.c.l.s4 %v1045_v1  ;;  %v403_v8 = vld [vmem:[%s327_s15 + $0x4] sm:$0xf]  ;;  %vm408_vm0 = vcmask 1043456   ;;  %v416_v9 = vmul.f32 %v402_v7, %v402_v7  ;;  %v400_v11 = vld [vmem:[%s318_s23] sm:$0xf]  ;;  %vm537_vm1 = vcmask 1041408  }
  0x5c   : > { %s385_s18 = scalar_select %p384_p13, %s1109_s28, 1  ;;  %v430_v3 = vshrl.u32 %v429_v0, 7  ;;  %v469_v4 = vand.u32 127, %v429_v0  ;;  %v417_v10 = vmul.f32 %v403_v8, %v403_v8  ;;  %v401_v12 = vld [vmem:[%s318_s23 + $0x4] sm:$0xf]  ;;  %v406_v13 = vmul.f32 %v400_v11, %v400_v11 }
  0x5d   : > { %v428_v6 = vunpack.c.0.s8 %v427_v2  ;;  %v407_v14 = vmul.f32 %v401_v12, %v401_v12  ;;  %v418_v15 = vsel %vm408_vm0, %v416_v9, 0.0  ;;  %s800_s16 = sshll.u32 %s1250_s29, 1  ;;  %s808_s9 = sshll.u32 %s1109_s28, 5  ;;  %vm478_vm2 = vcmask 1041409  }
  0x5e   : > { %v1265_v5 = vsub.s32 %v469_v4, %v430_v3  ;;  %s1267_s21 = sshll.u32 %s385_s18, 1  ;;  %v419_v16 = vsel %vm408_vm0, %v417_v10, 0.0  ;;  %v409_v20 = vsel %vm408_vm0, %v406_v13, 0.0  ;;  %v450_v30 = vsub.s32 0, %v430_v3  ;;  %s371_s23 = scalar_lea.vmem [#allocation8], %s800_s16 }
  0x5f   : > { %s391_s19 = scalar_lea.vmem %s1387_s3, %s1267_s21  ;;  %s387_s10 = scalar_lea.vmem %s1386_s2, %s1267_s21  ;;  %v431_v17 = vsub.s32 %v428_v6, %v430_v3  ;;  %v420_v19 = vadd.f32 %v419_v16, %v418_v15  ;;  %v410_v21 = vsel %vm408_vm0, %v407_v14, 0.0  ;;  %vm481_vm3 = vcmask 25600  }
  0x60   : > { %v405_v18 = vld [vmem:[%s391_s19] sm:$0x3]  ;;  %v411_v23 = vadd.f32 %v410_v21, %v409_v20  ;;  %s399_s17 = scalar_lea.vmem %s1391_s7, %s1267_s21  ;;  %s587_s26 = sshll.u32 %s371_s23, 4  ;;  %vm541_vm4 = vcmask 1024   ;;  %s1304_s26 = int_to_ptr.vmem [resolvable:$true] %s587_s26 }
  0x61   : > { %v404_v22 = vld [vmem:[%s387_s10] sm:$0x3]  ;;  %v421_v24 = vmax.f32 %v420_v19, 1e-24  ;;  %v490_v25 = vrot.slane %v405_v18, %v431_v17  ;;  %v543_v53 = vsel %vm537_vm1, %v405_v18, 0.0  ;;  %s395_s12 = scalar_lea.vmem %s1390_s6, %s1267_s21  ;;  %s364_s11 = scalar_lea.vmem [#allocation7], %s800_s16 }
  0x62   : > { %v412_v26 = vmax.f32 %v411_v23, 1e-24  ;;  %v432_v27 = vrot.slane %v404_v22, %v431_v17  ;;  %v538_v54 = vsel %vm537_vm1, %v404_v22, 0.0  ;;  %s574_s19 = sshll.u32 %s364_s11, 4  ;;  %s1302_s0 = scalar_lea.hbm %s1389_s5, %s808_s9  ;;  %s1312_s19 = int_to_ptr.vmem [resolvable:$true] %s574_s19 }
  0x63   : > { %872 = vrsqrt.f32 %v421_v24  ;;  %v491_v28 = vcombine.high %v490_v25, %v490_v25  ;;  %v498_v31 = vrot.slane %v490_v25, %v431_v17  ;;  %s1310_s8 = scalar_lea.hbm %s1388_s4, %s808_s9  ;;  %s553_s22 = scalar_lea.sflag [#allocation9], %s1250_s29 }
  0x64   : > { %874 = vrsqrt.f32 %v412_v26  ;;  %v433_v29 = vcombine.high %v432_v27, %v432_v27  ;;  %v440_v33 = vrot.slane %v432_v27, %v431_v17  ;;  %s936_s15 = scalar_lea.vmem %s1304_s26, 32  ;;  %p1411_p12 = scmp.ne.s32.totalorder %s1402_s13, 0 }
  0x65   : > { %v505_v32 = vrot.slane %v491_v28, %v431_v17  ;;  %v509_v35 = vrot.slane %v498_v31, %v450_v30  ;;  %p937_p2 = scmp.ne.s32.totalorder %s1304_s26, %s936_s15  ;;  %s1046_s18 = smov [#allocation8]  }
  0x66   : > { %v447_v34 = vrot.slane %v433_v29, %v431_v17  ;;  %v451_v38 = vrot.slane %v440_v33, %v450_v30  ;;  %s940_s9 = sshll.u32 %s1046_s18, 4  ;;  %s941_s9 = int_to_ptr.vmem [resolvable:$false] %s940_s9 }
  0x67   : > { %v513_v36 = vrot.slane %v505_v32, %v450_v30  ;;  %p938_p10 = pnand %p937_p2, %p1411_p12  ;;  %s942_s28 = scalar_lea.vmem %s941_s9, 64 }
  0x68   : > { %v455_v39 = vrot.slane %v447_v34, %v450_v30  ;;  %p943_p8 = scmp.lt.s32.totalorder %s1304_s26, %s941_s9  ;;  %p944_p9 = scmp.lt.s32.totalorder %s942_s28, %s936_s15 }
  0x69   : > { %p939_p7 = pneg %p938_p10 }
  0x6a   : > { %p945_p11 = por %p944_p9, %p943_p8 }
  0x6c   : > { %p946_p0 = pnand %p945_p11, %p939_p7 }
  0x6d   : > { %v873_v37 = vpop.eup %872 }
  0x6e   : > { %v875_v40 = vpop.eup %874  ;;  %v423_v41 = vmul.f32 %v873_v37, %v402_v7  ;;  %v424_v42 = vmul.f32 %v873_v37, %v403_v8 }
  0x6f   : > { %v414_v43 = vmul.f32 %v875_v40, %v400_v11  ;;  %v415_v44 = vmul.f32 %v875_v40, %v401_v12 }
  0x70   : > { %v516_v45 = vmul.f32 %v509_v35, %v423_v41  ;;  %v517_v46 = vmul.f32 %v513_v36, %v424_v42 }
  0x71   : > { %v458_v47 = vmul.f32 %v451_v38, %v414_v43  ;;  %v459_v48 = vmul.f32 %v455_v39, %v415_v44 }
  0x72   : > { %v518_v49 = vsel %vm408_vm0, %v516_v45, 0.0  ;;  %v521_v51 = vsel %vm408_vm0, %v517_v46, 0.0 }
  0x73   : > { %519 = vadd.xlane.f32.xlu1 %v518_v49  ;;  %v460_v50 = vsel %vm408_vm0, %v458_v47, 0.0  ;;  %v463_v52 = vsel %vm408_vm0, %v459_v48, 0.0 }
  0x74   : > { %461 = vadd.xlane.f32.xlu0 %v460_v50 }
  0x77   : > { %522 = vadd.xlane.f32.xlu1 %v521_v51 }
  0x78   : > { %464 = vadd.xlane.f32.xlu0 %v463_v52 }
  0x7b   : > { %544 = vadd.xlane.f32.xlu1 %v543_v53 }
  0x7c   : > { %539 = vadd.xlane.f32.xlu0 %v538_v54 }
 0x100   : > { %v520_v55 = vpop.xlane.xlu1 %519 }
 0x101   : > { %v462_v56 = vpop.xlane.xlu0 %461  ;;  %v529_v58 = vrot.slane %v520_v55, %v1265_v5 }
 0x102   : > { %v473_v61 = vrot.slane %v462_v56, %v1265_v5 }
 0x104   : > { %v523_v57 = vpop.xlane.xlu1 %522 }
 0x105   : > { %v533_v59 = vrot.slane %v523_v57, %v1265_v5  ;;  %v465_v60 = vpop.xlane.xlu0 %464 }
 0x106   : > { %v477_v62 = vrot.slane %v465_v60, %v1265_v5 }
 0x107   : > { %v534_v63 = vsel %vm478_vm2, %v533_v59, %v529_v58 }
 0x108   : > { %v479_v0 = vsel %vm478_vm2, %v477_v62, %v473_v61  ;;  %v545_v1 = vpop.xlane.xlu1 %544  ;;  %536 = vst.msk [vmem:[%s371_s23] sm:$0x3] %vm481_vm3, %v534_v63 }
 0x109   : > { %546 = vst.msk [vmem:[%s399_s17] sm:$0x3] %vm541_vm4, %v545_v1  ;;  %v540_v2 = vpop.xlane.xlu0 %539 }
 0x10a   : > { %482 = vst.msk [vmem:[%s364_s11] sm:$0x3] %vm481_vm3, %v479_v0 }
 0x10b   : > { %949 = shalt.err (!%p946_p0)
}
 0x10c   : > { %s950_s17 = scalar_lea.hbm %s1302_s0, 32  ;;  %s954_s20 = scalar_lea.hbm %s1389_s5, 64 }
 0x10d   : > { %p951_p4 = scmp.ne.s32.totalorder %s1302_s0, %s950_s17  ;;  %p955_p5 = scmp.lt.u32.totalorder %s1302_s0, %s1389_s5 }
 0x10e   : > { %p956_p6 = scmp.lt.u32.totalorder %s954_s20, %s950_s17  ;;  %p958_p2 = scmp.lt.u32.totalorder %s950_s17, %s1302_s0 }
 0x10f   : > { %p952_p1 = pnand %p951_p4, %p1411_p12 }
 0x110   : > { %p957_p13 = por %p956_p6, %p955_p5 }
 0x111   : > { %p953_p3 = pneg %p952_p1 }
 0x112   : > { %p959_p10 = por %p958_p2, %p957_p13 }
 0x114   : > { %p960_p7 = pnand %p959_p10, %p953_p3 }
 0x116   : > { %963 = shalt.err (!%p960_p7)
}
 0x117   : > { %817 = dma.vmem_to_hbm [thread:$0]  (%p1411_p12), %s1304_s26, 32, %s1302_s0, %s553_s22   ;;  %542 = vst.msk [vmem:[%s395_s12] sm:$0x3] %vm541_vm4, %v540_v2 }
 0x118   : > { %s548_s9 = scalar_lea.sflag [#allocation4], %s1250_s29  ;;  %s964_s28 = scalar_lea.vmem %s1312_s19, 32 }
 0x119   : > { %p965_p8 = scmp.ne.s32.totalorder %s1312_s19, %s964_s28  ;;  %s1047_s17 = smov [#allocation7]  }
 0x11a   : > { %s968_s23 = sshll.u32 %s1047_s17, 4  ;;  %s969_s23 = int_to_ptr.vmem [resolvable:$false] %s968_s23 }
 0x11b   : > { %p966_p9 = pnand %p965_p8, %p1411_p12  ;;  %s970_s11 = scalar_lea.vmem %s969_s23, 64 }
 0x11c   : > { %p971_p0 = scmp.lt.s32.totalorder %s1312_s19, %s969_s23  ;;  %p972_p4 = scmp.lt.s32.totalorder %s970_s11, %s964_s28 }
 0x11d   : > { %p967_p11 = pneg %p966_p9 }
 0x11e   : > { %p973_p1 = por %p972_p4, %p971_p0 }
 0x120   : > { %p974_p3 = pnand %p973_p1, %p967_p11 }
 0x122   : > { %977 = shalt.err (!%p974_p3)
}
 0x123   : > { %s978_s29 = scalar_lea.hbm %s1310_s8, 32  ;;  %s982_s12 = scalar_lea.hbm %s1388_s4, 64 }
 0x124   : > { %p979_p5 = scmp.ne.s32.totalorder %s1310_s8, %s978_s29  ;;  %p983_p2 = scmp.lt.u32.totalorder %s1310_s8, %s1388_s4 }
 0x125   : > { %p984_p10 = scmp.lt.u32.totalorder %s982_s12, %s978_s29  ;;  %p986_p8 = scmp.lt.u32.totalorder %s978_s29, %s1310_s8 }
 0x126   : > { %p980_p6 = pnand %p979_p5, %p1411_p12 }
 0x127   : > { %p985_p7 = por %p984_p10, %p983_p2 }
 0x128   : > { %p981_p13 = pneg %p980_p6 }
 0x129   : > { %p987_p9 = por %p986_p8, %p985_p7 }
 0x12b   : > { %p988_p11 = pnand %p987_p9, %p981_p13 }
 0x12d   : > { %991 = shalt.err (!%p988_p11)
}
 0x12e   : > { %816 = dma.vmem_to_hbm [thread:$0]  (%p1411_p12), %s1312_s19, 32, %s1310_s8, %s548_s9  }
 0x12f PF: > { %s605_s20 = sand.u32 1, %s1026_s24   ;;  %p1412_p0 = scmp.ne.s32.totalorder %s1403_s14, 0 }
 0x130   : > { %p1413_p4 = scmp.ge.s32.totalorder %s1038_s27, 2  ;;  %s606_s10 = scalar_lea.sflag [#allocation4], %s605_s20 }
 0x132   : > { %p828_p1 = pnand %p1413_p4, %p1412_p0 }
 0x134   : > { %1017 = dma.done.wait (!%p828_p1), %s606_s10, 32  }
 0x135   : > { %1019 = vsyncadd (!%p828_p1), %s606_s10, 4294967264  ;;  %s615_s16 = scalar_lea.sflag [#allocation9], %s605_s20 }
 0x136   : > { %1021 = dma.done.wait (!%p828_p1), %s615_s16, 32  }
 0x137   : > { %1023 = vsyncadd (!%p828_p1), %s615_s16, 4294967264  ;;  %s1414_s13 = sld [smem:[#allocation14_spill]]  ;;  %s1415_s26 = sld [smem:[#allocation15_spill]] }
 0x138   : > { %p27_p12 = scmp.ge.s32.totalorder %s1113_s30, 4   ;;  %s1416_s24 = smov %s1030_s25 }
 0x139   : > { %s1418_s27 = smov %s1113_s30 }
 0x13a   :  { %29 = sbr.rel (!%p27_p12) target bundleno = 11 (0xb), region = 141 }
 0x13d   : > { %s1417_s25 = smov %s1414_s13 }
 0x141   :  { %634 = vsyncpa [#allocation3], 1 }
 0x142   :  { %636 = vsyncpa [#allocation3 + $0x1], 1 }
 0x143   :  { %637 = vsyncpa [#allocation6], 1 }
 0x144   :  { %639 = vsyncpa [#allocation6 + $0x1], 1 }
 0x145   :  { %640 = vsyncpa [#allocation4], 1 }
 0x146   :  { %642 = vsyncpa [#allocation4 + $0x1], 1 }
 0x147   :  { %643 = vsyncpa [#allocation9], 1 }
 0x148   :  { %645 = vsyncpa [#allocation9 + $0x1], 1 }

</bundles_post_ra>
